<compile_context>
chip_gen: v5e
topology: v5e:2x2
jax: 0.10.0
libtpu: 0.0.40
codegen_flags: <defaults>
</compile_context>

<pallas_src>
import functools

import jax
import jax.numpy as jnp
from jax import lax
from jax.experimental import pallas as pl
from jax.experimental.pallas import tpu as pltpu


# ----------------------------------------------------------------------------
# fused kernel
# ----------------------------------------------------------------------------
def _stc_fused_kernel(adj_wI_ref, adj_w_ref, adj_q2w_tr_ref, x_word_ref,
                      word_emb_ref, w_gcn1_ref, w_gcn2_ref, wc_g_ref, wc_e_ref,
                      w_fgcn_ref, w_folded_ref, b_fc_ref,
                      scores_ref, *, threshold):
    f32 = jnp.float32

    # ---- word-graph GCN stack -----------------------------------------------
    # identity=True folded into the adjacency at trace time: (A + I) @ (x @ W1)
    xw1 = jnp.dot(x_word_ref[...], w_gcn1_ref[...], preferred_element_type=f32)
    h1 = jnp.maximum(jnp.dot(adj_wI_ref[...], xw1, preferred_element_type=f32),
                     0.0)
    xw2 = jnp.dot(h1, w_gcn2_ref[...], preferred_element_type=f32)
    word_gcn = jnp.dot(adj_w_ref[...], xw2, preferred_element_type=f32)

    # ---- query-to-word mean aggregation (train rows only, gather reordered) --
    adj_tr = adj_q2w_tr_ref[...]                       # (n_train, n_word)
    inv_row = 1.0 / (jnp.sum(adj_tr, axis=-1, keepdims=True) + 1e-9)
    agg_gcn = jnp.dot(adj_tr, word_gcn, preferred_element_type=f32) * inv_row
    agg_emb = jnp.dot(adj_tr, word_emb_ref[...], preferred_element_type=f32) * inv_row

    # ---- doc feature projection with pre-split W_comp (no lane concat) -------
    doc = (jnp.dot(agg_gcn, wc_g_ref[...], preferred_element_type=f32)
           + jnp.dot(agg_emb, wc_e_ref[...], preferred_element_type=f32))

    # ---- cosine-similarity doc adjacency (threshold + row-normalize) ---------
    xn = doc * lax.rsqrt(jnp.sum(doc * doc, axis=-1, keepdims=True) + 1e-9)
    # xn @ xn.T without materializing a transpose: contract last dims (NT GEMM).
    s = lax.dot_general(xn, xn, (((1,), (1,)), ((), ())),
                        preferred_element_type=f32)
    s = jnp.where(s > threshold, s, 0.0)               # single vselect
    adj_doc = s / (jnp.sum(s, axis=-1, keepdims=True) + 1e-9)

    # ---- doc-level GCN stack + folded classifier ------------------------------
    # W_folded = W_fgcn2 @ W_fc.T (folded at trace time; no nonlinearity between).
    xw3 = jnp.dot(doc, w_fgcn_ref[...], preferred_element_type=f32)
    h3 = jnp.dot(adj_doc, xw3, preferred_element_type=f32)
    xw4 = jnp.dot(h3, w_folded_ref[...], preferred_element_type=f32)
    scores_ref[...] = (jnp.dot(adj_doc, xw4, preferred_element_type=f32)
                       + b_fc_ref[...])


# ----------------------------------------------------------------------------
# wrapper: single pallas_call, whole-array VMEM blocks, no grid
# ----------------------------------------------------------------------------
def simple_stc_forward(adj, feature, params, train_idx, threshold):
    n_train = int(train_idx.shape[0])
    label_num = int(params['W_fc'].shape[0])
    d_gcn_out = int(params['W_gcn2'].shape[1])

    adj_word = adj['word'].astype(jnp.float32)
    n_word = adj_word.shape[0]
    # Fold GCN identity term into the adjacency (trace time).
    adj_word_I = adj_word + jnp.eye(n_word, dtype=jnp.float32)

    # Gather-before-mean reorder: pick train rows of q2w at trace time.
    # TODO(synk): at scale, do this via PrefetchScalarGridSpec scalar-prefetch
    #             indices + pl.Element / pl.ds gather instead of a host-side take.
    adj_q2w_train = jnp.take(adj['q2w'].astype(jnp.float32),
                             train_idx.astype(jnp.int32), axis=0)

    # W_comp is PyTorch (out, in=[gcn | word_emb]); pre-split + pre-transpose so
    # the kernel never concatenates along the lane axis nor transposes.
    wc_g = params['W_comp'][:, :d_gcn_out].T           # (d_gcn_out, d_comp_out)
    wc_e = params['W_comp'][:, d_gcn_out:].T           # (d_word_emb, d_comp_out)

    # Fold final_GCN_2 weight with the FC weight (no nonlinearity in between).
    w_folded = params['W_fgcn2'] @ params['W_fc'].T    # (d_fgcn_out, label_num)

    inputs = (adj_word_I, adj_word, adj_q2w_train,
              feature['word'].astype(jnp.float32),
              feature['word_emb'].astype(jnp.float32),
              params['W_gcn1'], params['W_gcn2'], wc_g, wc_e,
              params['W_fgcn'], w_folded, params['b_fc'])

    kernel = functools.partial(_stc_fused_kernel, threshold=float(threshold))
    return pl.pallas_call(
        kernel,
        out_shape=jax.ShapeDtypeStruct((n_train, label_num), jnp.float32),
        in_specs=[pl.BlockSpec(memory_space=pltpu.MemorySpace.VMEM)
                  for _ in inputs],
        out_specs=pl.BlockSpec(memory_space=pltpu.MemorySpace.VMEM),
    )(*inputs)


# ----------------------------------------------------------------------------
# main
# ----------------------------------------------------------------------------
if __name__ == "__main__":
    key = jax.random.PRNGKey(0)
    ks = jax.random.split(key, 12)

    # dims: in_features_dim = [32, 64, 32, 32], out_features_dim = [32, 32, 32, 8]
    n_word, n_doc, n_train = 16, 10, 8
    d_word_in, d_gcn_out = 32, 32
    d_word_emb = 32
    d_comp_in, d_comp_out = d_gcn_out + d_word_emb, 32   # 64 -> 32
    d_fgcn_out = 32
    label_num = 8
    threshold = 0.1
    train_idx = jnp.arange(n_train, dtype=jnp.int32)

    # inputs
    adj_word = jax.random.uniform(ks[0], (n_word, n_word), jnp.float32)
    adj_q2w = jax.random.uniform(ks[1], (n_doc, n_word), jnp.float32)
    feat_word = jax.random.normal(ks[2], (n_word, d_word_in), jnp.float32)
    feat_word_emb = jax.random.normal(ks[3], (n_word, d_word_emb), jnp.float32)

    adj = {'word': adj_word, 'q2w': adj_q2w}
    feature = {'word': feat_word, 'word_emb': feat_word_emb}

    # parameters (PyTorch layout for Linear weights: (out, in))
    s = 0.1
    params = {
        'W_gcn1':  s * jax.random.normal(ks[4], (d_word_in, d_gcn_out)),
        'W_gcn2':  s * jax.random.normal(ks[5], (d_gcn_out, d_gcn_out)),
        'W_comp':  s * jax.random.normal(ks[6], (d_comp_out, d_comp_in)),
        'W_fgcn':  s * jax.random.normal(ks[7], (d_comp_out, d_fgcn_out)),
        'W_fgcn2': s * jax.random.normal(ks[8], (d_fgcn_out, d_fgcn_out)),
        'W_fc':    s * jax.random.normal(ks[9], (label_num, d_fgcn_out)),
        'b_fc':    s * jax.random.normal(ks[10], (1, label_num)),
    }
    params = {k: v.astype(jnp.float32) for k, v in params.items()}

    scores = simple_stc_forward(adj, feature, params, train_idx, threshold)
    scores = jax.block_until_ready(scores)
    assert scores.shape == (n_train, label_num), scores.shape
    assert jnp.all(jnp.isfinite(scores))
    print("KERNEL_OK")
</pallas_src>

<mosaic_0001>
module attributes {stable_mosaic.version = 11 : i64} {
  func.func @_stc_fused_kernel(%arg0: memref<16x16xf32, #tpu.memory_space<vmem>>, %arg1: memref<16x16xf32, #tpu.memory_space<vmem>>, %arg2: memref<8x16xf32, #tpu.memory_space<vmem>>, %arg3: memref<16x32xf32, #tpu.memory_space<vmem>>, %arg4: memref<16x32xf32, #tpu.memory_space<vmem>>, %arg5: memref<32x32xf32, #tpu.memory_space<vmem>>, %arg6: memref<32x32xf32, #tpu.memory_space<vmem>>, %arg7: memref<32x32xf32, #tpu.memory_space<vmem>>, %arg8: memref<32x32xf32, #tpu.memory_space<vmem>>, %arg9: memref<32x32xf32, #tpu.memory_space<vmem>>, %arg10: memref<32x8xf32, #tpu.memory_space<vmem>>, %arg11: memref<1x8xf32, #tpu.memory_space<vmem>>, %arg12: memref<8x8xf32, #tpu.memory_space<vmem>>) attributes {dimension_semantics = [], scalar_prefetch = 0 : i64, scratch_operands = 0 : i64, tpu.core_type = #tpu.core_type<tc>} {
    %c0 = arith.constant 0 : index
    %c0_0 = arith.constant 0 : index
    %0 = vector.load %arg3[%c0, %c0_0] : memref<16x32xf32, #tpu.memory_space<vmem>>, vector<16x32xf32>
    %c0_1 = arith.constant 0 : index
    %c0_2 = arith.constant 0 : index
    %1 = vector.load %arg5[%c0_1, %c0_2] : memref<32x32xf32, #tpu.memory_space<vmem>>, vector<32x32xf32>
    %cst = arith.constant dense<0.000000e+00> : vector<16x32xf32>
    %2 = tpu.matmul %0, %1, %cst {dimension_numbers = #tpu.dot_dimension_numbers<[1], [0], [0], [1], [0, 0, 1, 1], [], []>} : vector<16x32xf32>, vector<32x32xf32>, vector<16x32xf32> -> vector<16x32xf32>
    %c0_3 = arith.constant 0 : index
    %c0_4 = arith.constant 0 : index
    %3 = vector.load %arg0[%c0_3, %c0_4] : memref<16x16xf32, #tpu.memory_space<vmem>>, vector<16x16xf32>
    %cst_5 = arith.constant dense<0.000000e+00> : vector<16x32xf32>
    %4 = tpu.matmul %3, %2, %cst_5 {dimension_numbers = #tpu.dot_dimension_numbers<[1], [0], [0], [1], [0, 0, 1, 1], [], []>} : vector<16x16xf32>, vector<16x32xf32>, vector<16x32xf32> -> vector<16x32xf32>
    %cst_6 = arith.constant 0.000000e+00 : f32
    %5 = vector.broadcast %cst_6 : f32 to vector<16x32xf32>
    %6 = arith.maximumf %4, %5 : vector<16x32xf32>
    %c0_7 = arith.constant 0 : index
    %c0_8 = arith.constant 0 : index
    %7 = vector.load %arg6[%c0_7, %c0_8] : memref<32x32xf32, #tpu.memory_space<vmem>>, vector<32x32xf32>
    %cst_9 = arith.constant dense<0.000000e+00> : vector<16x32xf32>
    %8 = tpu.matmul %6, %7, %cst_9 {dimension_numbers = #tpu.dot_dimension_numbers<[1], [0], [0], [1], [0, 0, 1, 1], [], []>} : vector<16x32xf32>, vector<32x32xf32>, vector<16x32xf32> -> vector<16x32xf32>
    %c0_10 = arith.constant 0 : index
    %c0_11 = arith.constant 0 : index
    %9 = vector.load %arg1[%c0_10, %c0_11] : memref<16x16xf32, #tpu.memory_space<vmem>>, vector<16x16xf32>
    %cst_12 = arith.constant dense<0.000000e+00> : vector<16x32xf32>
    %10 = tpu.matmul %9, %8, %cst_12 {dimension_numbers = #tpu.dot_dimension_numbers<[1], [0], [0], [1], [0, 0, 1, 1], [], []>} : vector<16x16xf32>, vector<16x32xf32>, vector<16x32xf32> -> vector<16x32xf32>
    %c0_13 = arith.constant 0 : index
    %c0_14 = arith.constant 0 : index
    %11 = vector.load %arg2[%c0_13, %c0_14] : memref<8x16xf32, #tpu.memory_space<vmem>>, vector<8x16xf32>
    %cst_15 = arith.constant dense<0.000000e+00> : vector<8xf32>
    %12 = vector.multi_reduction <add>, %11, %cst_15 [1] : vector<8x16xf32> to vector<8xf32>
    %13 = vector.shape_cast %12 : vector<8xf32> to vector<8x1xf32>
    %cst_16 = arith.constant 9.99999971E-10 : f32
    %14 = vector.broadcast %cst_16 : f32 to vector<8x1xf32>
    %15 = arith.addf %13, %14 : vector<8x1xf32>
    %cst_17 = arith.constant 1.000000e+00 : f32
    %16 = vector.broadcast %cst_17 : f32 to vector<8x1xf32>
    %17 = arith.divf %16, %15 : vector<8x1xf32>
    %cst_18 = arith.constant dense<0.000000e+00> : vector<8x32xf32>
    %18 = tpu.matmul %11, %10, %cst_18 {dimension_numbers = #tpu.dot_dimension_numbers<[1], [0], [0], [1], [0, 0, 1, 1], [], []>} : vector<8x16xf32>, vector<16x32xf32>, vector<8x32xf32> -> vector<8x32xf32>
    %19 = vector.broadcast %17 : vector<8x1xf32> to vector<8x32xf32>
    %20 = arith.mulf %18, %19 : vector<8x32xf32>
    %c0_19 = arith.constant 0 : index
    %c0_20 = arith.constant 0 : index
    %21 = vector.load %arg4[%c0_19, %c0_20] : memref<16x32xf32, #tpu.memory_space<vmem>>, vector<16x32xf32>
    %cst_21 = arith.constant dense<0.000000e+00> : vector<8x32xf32>
    %22 = tpu.matmul %11, %21, %cst_21 {dimension_numbers = #tpu.dot_dimension_numbers<[1], [0], [0], [1], [0, 0, 1, 1], [], []>} : vector<8x16xf32>, vector<16x32xf32>, vector<8x32xf32> -> vector<8x32xf32>
    %23 = vector.broadcast %17 : vector<8x1xf32> to vector<8x32xf32>
    %24 = arith.mulf %22, %23 : vector<8x32xf32>
    %c0_22 = arith.constant 0 : index
    %c0_23 = arith.constant 0 : index
    %25 = vector.load %arg7[%c0_22, %c0_23] : memref<32x32xf32, #tpu.memory_space<vmem>>, vector<32x32xf32>
    %cst_24 = arith.constant dense<0.000000e+00> : vector<8x32xf32>
    %26 = tpu.matmul %20, %25, %cst_24 {dimension_numbers = #tpu.dot_dimension_numbers<[1], [0], [0], [1], [0, 0, 1, 1], [], []>} : vector<8x32xf32>, vector<32x32xf32>, vector<8x32xf32> -> vector<8x32xf32>
    %c0_25 = arith.constant 0 : index
    %c0_26 = arith.constant 0 : index
    %27 = vector.load %arg8[%c0_25, %c0_26] : memref<32x32xf32, #tpu.memory_space<vmem>>, vector<32x32xf32>
    %cst_27 = arith.constant dense<0.000000e+00> : vector<8x32xf32>
    %28 = tpu.matmul %24, %27, %cst_27 {dimension_numbers = #tpu.dot_dimension_numbers<[1], [0], [0], [1], [0, 0, 1, 1], [], []>} : vector<8x32xf32>, vector<32x32xf32>, vector<8x32xf32> -> vector<8x32xf32>
    %29 = arith.addf %26, %28 : vector<8x32xf32>
    %30 = arith.mulf %29, %29 : vector<8x32xf32>
    %cst_28 = arith.constant dense<0.000000e+00> : vector<8xf32>
    %31 = vector.multi_reduction <add>, %30, %cst_28 [1] : vector<8x32xf32> to vector<8xf32>
    %32 = vector.shape_cast %31 : vector<8xf32> to vector<8x1xf32>
    %cst_29 = arith.constant 9.99999971E-10 : f32
    %33 = vector.broadcast %cst_29 : f32 to vector<8x1xf32>
    %34 = arith.addf %32, %33 : vector<8x1xf32>
    %35 = math.rsqrt %34 : vector<8x1xf32>
    %36 = vector.broadcast %35 : vector<8x1xf32> to vector<8x32xf32>
    %37 = arith.mulf %29, %36 : vector<8x32xf32>
    %cst_30 = arith.constant dense<0.000000e+00> : vector<8x8xf32>
    %38 = tpu.matmul %37, %37, %cst_30 {dimension_numbers = #tpu.dot_dimension_numbers<[1], [1], [0], [0], [0, 0, 1, 0], [], []>} : vector<8x32xf32>, vector<8x32xf32>, vector<8x8xf32> -> vector<8x8xf32>
    %cst_31 = arith.constant 1.000000e-01 : f32
    %39 = vector.broadcast %cst_31 : f32 to vector<8x8xf32>
    %40 = arith.cmpf ogt, %38, %39 : vector<8x8xf32>
    %cst_32 = arith.constant 0.000000e+00 : f32
    %41 = vector.broadcast %cst_32 : f32 to vector<8x8xf32>
    %42 = arith.select %40, %38, %41 : vector<8x8xi1>, vector<8x8xf32>
    %cst_33 = arith.constant dense<0.000000e+00> : vector<8xf32>
    %43 = vector.multi_reduction <add>, %42, %cst_33 [1] : vector<8x8xf32> to vector<8xf32>
    %44 = vector.shape_cast %43 : vector<8xf32> to vector<8x1xf32>
    %cst_34 = arith.constant 9.99999971E-10 : f32
    %45 = vector.broadcast %cst_34 : f32 to vector<8x1xf32>
    %46 = arith.addf %44, %45 : vector<8x1xf32>
    %47 = vector.broadcast %46 : vector<8x1xf32> to vector<8x8xf32>
    %48 = arith.divf %42, %47 : vector<8x8xf32>
    %c0_35 = arith.constant 0 : index
    %c0_36 = arith.constant 0 : index
    %49 = vector.load %arg9[%c0_35, %c0_36] : memref<32x32xf32, #tpu.memory_space<vmem>>, vector<32x32xf32>
    %cst_37 = arith.constant dense<0.000000e+00> : vector<8x32xf32>
    %50 = tpu.matmul %29, %49, %cst_37 {dimension_numbers = #tpu.dot_dimension_numbers<[1], [0], [0], [1], [0, 0, 1, 1], [], []>} : vector<8x32xf32>, vector<32x32xf32>, vector<8x32xf32> -> vector<8x32xf32>
    %cst_38 = arith.constant dense<0.000000e+00> : vector<8x32xf32>
    %51 = tpu.matmul %48, %50, %cst_38 {dimension_numbers = #tpu.dot_dimension_numbers<[1], [0], [0], [1], [0, 0, 1, 1], [], []>} : vector<8x8xf32>, vector<8x32xf32>, vector<8x32xf32> -> vector<8x32xf32>
    %c0_39 = arith.constant 0 : index
    %c0_40 = arith.constant 0 : index
    %52 = vector.load %arg10[%c0_39, %c0_40] : memref<32x8xf32, #tpu.memory_space<vmem>>, vector<32x8xf32>
    %cst_41 = arith.constant dense<0.000000e+00> : vector<8x8xf32>
    %53 = tpu.matmul %51, %52, %cst_41 {dimension_numbers = #tpu.dot_dimension_numbers<[1], [0], [0], [1], [0, 0, 1, 1], [], []>} : vector<8x32xf32>, vector<32x8xf32>, vector<8x8xf32> -> vector<8x8xf32>
    %cst_42 = arith.constant dense<0.000000e+00> : vector<8x8xf32>
    %54 = tpu.matmul %48, %53, %cst_42 {dimension_numbers = #tpu.dot_dimension_numbers<[1], [0], [0], [1], [0, 0, 1, 1], [], []>} : vector<8x8xf32>, vector<8x8xf32>, vector<8x8xf32> -> vector<8x8xf32>
    %c0_43 = arith.constant 0 : index
    %c0_44 = arith.constant 0 : index
    %55 = vector.load %arg11[%c0_43, %c0_44] : memref<1x8xf32, #tpu.memory_space<vmem>>, vector<1x8xf32>
    %56 = vector.broadcast %55 : vector<1x8xf32> to vector<8x8xf32>
    %57 = arith.addf %54, %56 : vector<8x8xf32>
    %c0_45 = arith.constant 0 : index
    %c0_46 = arith.constant 0 : index
    %58 = vector.load %arg12[%c0_45, %c0_46] : memref<8x8xf32, #tpu.memory_space<vmem>>, vector<8x8xf32>
    tpu.vector_store %arg12[%c0_45, %c0_46], %57 {strides = array<i32>} : memref<8x8xf32, #tpu.memory_space<vmem>>, vector<8x8xf32>,
    return
  }
}

</mosaic_0001>

<bundles_post_ra>
// kernel: tpu_custom_call.1
= control target key start
LH: loop header
LB: loop body
LE: loop exit
PB: predicated region body
PF: predicated region fallthrough
CT: control target
= control target key end

     0   :  { %17 = vsyncpa [#allocation3], 0  ;;  %s1049_s0 = inlined_call_operand.hbm [shape: f32[16,16], index: 0, kind: input, shape index: {}]   ;;  %s1050_s1 = inlined_call_operand.hbm [shape: f32[16,16], index: 1, kind: input, shape index: {}]   ;;  %s1051_s2 = inlined_call_operand.vmem [shape: f32[8,16], index: 2, kind: input, shape index: {}]   ;;  %s1052_s3 = inlined_call_operand.hbm [shape: f32[16,32], index: 3, kind: input, shape index: {}]   ;;  %s1053_s4 = inlined_call_operand.hbm [shape: f32[16,32], index: 4, kind: input, shape index: {}]   ;;  %s1054_s5 = inlined_call_operand.vmem [shape: f32[32,32], index: 5, kind: input, shape index: {}]   ;;  %s1055_s6 = inlined_call_operand.hbm [shape: f32[32,32], index: 6, kind: input, shape index: {}]   ;;  %s1056_s7 = inlined_call_operand.hbm [shape: f32[32,32], index: 7, kind: input, shape index: {}]   ;;  %s1057_s8 = inlined_call_operand.hbm [shape: f32[32,32], index: 8, kind: input, shape index: {}]   ;;  %s1058_s9 = inlined_call_operand.hbm [shape: f32[32,32], index: 9, kind: input, shape index: {}]   ;;  %s1059_s10 = inlined_call_operand.vmem [shape: f32[32,8], index: 10, kind: input, shape index: {}]   ;;  %s1060_s11 = inlined_call_operand.vmem [shape: f32[1,8], index: 11, kind: input, shape index: {}]   ;;  %s1061_s12 = inlined_call_operand.hbm [shape: f32[8,8], index: 12, kind: output, shape index: {}]  }
   0x1   :  { %18 = vsyncpa [#allocation6], 0 }
   0x2   :  { %19 = vsyncpa [#allocation9], 0 }
   0x3   :  { %20 = vsyncpa [#allocation12], 0 }
   0x4   :  { %21 = vsyncpa [#allocation15], 0 }
   0x5   :  { %22 = vsyncpa [#allocation4], 0  ;;  %s40_s23 = sshll.u32 %s1050_s1, 4  ;;  %s870_s24 = smov [#allocation5]   ;;  %s41_s23 = int_to_ptr.hbm [resolvable:$true] %s40_s23 }
   0x6   :  { %s42_s25 = sshll.u32 %s870_s24, 4  ;;  %s68_s28 = sshll.u32 %s1053_s4, 4  ;;  %s43_s25 = int_to_ptr.vmem [resolvable:$true] %s42_s25  ;;  %s69_s28 = int_to_ptr.hbm [resolvable:$true] %s68_s28 }
   0x7   :  { %s871_s29 = smov 128   ;;  %s872_s30 = smov 8  }
   0x8   :  { %48 = dma.hbm_to_vmem [thread:$0]  %s41_s23, 256, %s43_s25, [#allocation6], %s871_s29, %s871_s29, %s872_s30  }
   0x9   :  { %s873_s13 = smov [#allocation8]   ;;  %s96_s1 = sshll.u32 %s1056_s7, 4  ;;  %s97_s1 = int_to_ptr.hbm [resolvable:$true] %s96_s1 }
   0xa   :  { %s70_s14 = sshll.u32 %s873_s13, 4  ;;  %s27_s18 = sshll.u32 %s1049_s0, 4  ;;  %s71_s14 = int_to_ptr.vmem [resolvable:$true] %s70_s14  ;;  %s28_s18 = int_to_ptr.hbm [resolvable:$true] %s27_s18 }
   0xb   :  { %76 = dma.hbm_to_vmem [thread:$0]  %s69_s28, 256, %s71_s14, [#allocation9], %s871_s29, %s871_s29, %s872_s30  }
   0xc   :  { %s874_s19 = smov [#allocation11]   ;;  %s875_s21 = smov [#allocation2]  }
   0xd   :  { %s98_s20 = sshll.u32 %s874_s19, 4  ;;  %s29_s7 = sshll.u32 %s875_s21, 4  ;;  %s99_s20 = int_to_ptr.vmem [resolvable:$true] %s98_s20  ;;  %s30_s7 = int_to_ptr.vmem [resolvable:$true] %s29_s7 }
   0xe   :  { %104 = dma.hbm_to_vmem [thread:$0]  %s97_s1, 512, %s99_s20, [#allocation12], %s871_s29, %s871_s29, %s872_s30  }
   0xf   :  { %s55_s24 = sshll.u32 %s1052_s3, 4  ;;  %s83_s26 = sshll.u32 %s1055_s6, 4  ;;  %s56_s24 = int_to_ptr.hbm [resolvable:$true] %s55_s24  ;;  %s84_s26 = int_to_ptr.hbm [resolvable:$true] %s83_s26 }
  0x10   :  { %35 = dma.hbm_to_vmem [thread:$0]  %s28_s18, 256, %s30_s7, [#allocation3], %s871_s29, %s871_s29, %s872_s30  }
  0x11   :  { %s876_s27 = smov [#allocation7]   ;;  %s877_s13 = smov [#allocation10]  }
  0x12   :  { %s57_s28 = sshll.u32 %s876_s27, 4  ;;  %s85_s3 = sshll.u32 %s877_s13, 4  ;;  %s58_s28 = int_to_ptr.vmem [resolvable:$true] %s57_s28  ;;  %s86_s3 = int_to_ptr.vmem [resolvable:$true] %s85_s3 }
  0x13   :  { %63 = dma.hbm_to_vmem [thread:$0]  %s56_s24, 256, %s58_s28, [#allocation6], %s871_s29, %s871_s29, %s872_s30  }
  0x14   :  { %s109_s16 = sshll.u32 %s1057_s8, 4  ;;  %s122_s4 = sshll.u32 %s1058_s9, 4  ;;  %s110_s16 = int_to_ptr.hbm [resolvable:$true] %s109_s16  ;;  %s123_s4 = int_to_ptr.hbm [resolvable:$true] %s122_s4 }
  0x15   :  { %91 = dma.hbm_to_vmem [thread:$0]  %s84_s26, 512, %s86_s3, [#allocation9], %s871_s29, %s871_s29, %s872_s30  }
  0x16   :  { %s878_s17 = smov [#allocation13]   ;;  %s879_s19 = smov [#allocation14]  }
  0x17   :  { %s111_s18 = sshll.u32 %s878_s17, 4  ;;  %s124_s8 = sshll.u32 %s879_s19, 4  ;;  %s112_s18 = int_to_ptr.vmem [resolvable:$true] %s111_s18  ;;  %s125_s8 = int_to_ptr.vmem [resolvable:$true] %s124_s8 }
  0x18   :  { %117 = dma.hbm_to_vmem [thread:$0]  %s110_s16, 512, %s112_s18, [#allocation12], %s871_s29, %s871_s29, %s872_s30  }
  0x19   :  { %130 = dma.hbm_to_vmem [thread:$0]  %s123_s4, 512, %s125_s8, [#allocation15], %s871_s29, %s871_s29, %s872_s30  }
  0x1a   :  { %858 = dma.done.wait [#allocation3], 256  }
  0x1b   :  { %859 = vsyncadd [#allocation3], 4294967040 }
  0x1c   :  { %860 = dma.done.wait [#allocation6], 512  }
  0x1d   :  { %861 = vsyncadd [#allocation6], 4294966784 }
  0x1e   :  { %862 = dma.done.wait [#allocation9], 768  }
  0x1f   :  { %863 = vsyncadd [#allocation9], 4294966528 }
  0x20   :  { %864 = dma.done.wait [#allocation12], 1024  }
  0x21   :  { %865 = vsyncadd [#allocation12], 4294966272 }
  0x22   :  { %866 = dma.done.wait [#allocation15], 512  }
  0x23   :  { %867 = vsyncadd [#allocation15], 4294966784  ;;  %v172_v0 = vld [vmem:[%s1054_s5 + $0x18] sm:$0xff]  ;;  %v171_v1 = vld [vmem:[%s1054_s5 + $0x10] sm:$0xff]  ;;  %vm173_vm0 = vcmask 261120   ;;  %vm205_vm1 = vcmask 130048  }
  0x24   :  { %192 = vmatpush.msra.mxu0 %v172_v0  ;;  %v170_v2 = vld [vmem:[%s1054_s5 + $0x8] sm:$0xff]  ;;  %v169_v3 = vld [vmem:[%s1054_s5] sm:$0xff]  ;;  %v240_v6 = vld [vmem:[#allocation10 + $0x18] sm:$0xff]  ;;  %vm463_vm9 = vcmask 64512   ;;  %s880_s16 = smov [#allocation16]   ;;  %s592_s17 = sshll.u32 %s1061_s12, 4  ;;  %s593_s17 = int_to_ptr.hbm [resolvable:$true] %s592_s17 }
  0x25   :  { %v167_v4 = vld [vmem:[#allocation7] sm:$0xff]  ;;  %v168_v5 = vld [vmem:[#allocation7 + $0x8] sm:$0xff]  ;;  %v239_v7 = vld [vmem:[#allocation10 + $0x10] sm:$0xff]  ;;  %259 = vmatpush.msra.mxu2 %v240_v6  ;;  %s590_s6 = sshll.u32 %s880_s16, 4  ;;  %s591_s6 = int_to_ptr.vmem [resolvable:$true] %s590_s6 }
  0x26   :  { %193 = vmatpush.msra.mxu0 %v171_v1  ;;  %v203_v10 = vld [vmem:[#allocation2] sm:$0xff]  ;;  %v204_v11 = vld [vmem:[#allocation2 + $0x8] sm:$0xff]  ;;  %v270_v22 = vld [vmem:[#allocation5] sm:$0xff] }
  0x27   :  { %260 = vmatpush.msra.mxu2 %v239_v7  ;;  %v238_v12 = vld [vmem:[#allocation10 + $0x8] sm:$0xff]  ;;  %v237_v13 = vld [vmem:[#allocation10] sm:$0xff]  ;;  %v346_v23 = vld [vmem:[#allocation8 + $0x8] sm:$0xff] }
  0x28   :  { %194 = vmatpush.msra.mxu0 %v170_v2  ;;  %v301_v18 = vld [vmem:[%s1051_s2] sm:$0xff]  ;;  %v345_v24 = vld [vmem:[#allocation8] sm:$0xff]  ;;  %v271_v25 = vld [vmem:[#allocation5 + $0x8] sm:$0xff] }
  0x29   :  { %261 = vmatpush.msra.mxu2 %v238_v12  ;;  %v302_v19 = vsel %vm205_vm1, %v301_v18, 0.0  ;;  %v375_v27 = vld [vmem:[#allocation13 + $0x18] sm:$0xff]  ;;  %v374_v28 = vld [vmem:[#allocation13 + $0x10] sm:$0xff]  ;;  %v373_v30 = vld [vmem:[#allocation13 + $0x8] sm:$0xff] }
  0x2a   :  { %195 = vmatpush.msra.mxu0 %v169_v3  ;;  %303 = vadd.xlane.f32.xlu0 %v302_v19  ;;  %v372_v31 = vld [vmem:[#allocation13] sm:$0xff]  ;;  %v371_v32 = vld [vmem:[#allocation11 + $0x18] sm:$0xff]  ;;  %v370_v33 = vld [vmem:[#allocation11 + $0x10] sm:$0xff] }
  0x2b   :  { %606 = vmatmul.msk.f32.vlgmr.msra.gmra.mxu0 %vm173_vm0, %v167_v4  ;;  %262 = vmatpush.msra.mxu2 %v237_v13  ;;  %v369_v48 = vld [vmem:[#allocation11 + $0x8] sm:$0xff]  ;;  %v368_v49 = vld [vmem:[#allocation11] sm:$0xff]  ;;  %v486_v50 = vld [vmem:[#allocation14 + $0x18] sm:$0xff] }
  0x2c   :  { %391 = vmatpush.msrb.mxu0 %v375_v27  ;;  %v485_v51 = vld [vmem:[#allocation14 + $0x10] sm:$0xff]  ;;  %v484_v54 = vld [vmem:[#allocation14 + $0x8] sm:$0xff]  ;;  %v483_v55 = vld [vmem:[#allocation14] sm:$0xff] }
  0x2d   :  { %414 = vmatpush.msrb.mxu2 %v371_v32  ;;  %v535_v12 = vld [vmem:[%s1059_s10 + $0x10] sm:$0xff]  ;;  %v534_v13 = vld [vmem:[%s1059_s10 + $0x8] sm:$0xff]  ;;  %v533_v27 = vld [vmem:[%s1059_s10] sm:$0xff] }
  0x2e   :  { %392 = vmatpush.msrb.mxu0 %v374_v28 }
  0x2f   :  { %415 = vmatpush.msrb.mxu2 %v370_v33 }
  0x30   :  { %393 = vmatpush.msrb.mxu0 %v373_v30  ;;  %v635_v30 = vld [vmem:[%s1060_s11] ss:$0 sm:$0xff] }
  0x31   :  { %416 = vmatpush.msrb.mxu2 %v369_v48 }
  0x32   :  { %394 = vmatpush.msrb.mxu0 %v372_v31 }
  0x33   :  { %607 = vmatmul.msk.f32.gmra.mxu0 %vm173_vm0, %v168_v5  ;;  %417 = vmatpush.msrb.mxu2 %v368_v49 }
  0x9d   :  { %v304_v26 = vpop.xlane.xlu0 %303 }
  0x9e   :  { %v305_v29 = vadd.f32 1e-09, %v304_v26 }
  0xa0   :  { %636 = vrcp.f32 %v305_v29  ;;  %vm311_vm2 = vweird.f32 %v305_v29  ;;  %v317_v39 = vand.u32 2147483648, %v305_v29  ;;  %v315_v41 = vand.u32 2147483647, %v305_v29 }
  0xa2   :  { %v318_v43 = vor.u32 1.1754944e-38, %v317_v39  ;;  %vm316_vm5 = vcmp.eq.f32.partialorder %v315_v41, 8.507059e+37 }
  0xa6   :  { %v637_v34 = vpop.eup %636 }
  0xa7   :  { %v307_v35 = vmul.f32 %v637_v34, %v305_v29  ;;  %vm312_vm3 = vweird.f32 %v637_v34 }
  0xa8   :  { %v197_v8 = vpop.f32.mrf.mxu0  ;;  %vm313_vm4 = vmor %vm311_vm2, %vm312_vm3 }
  0xa9   :  { %v308_v36 = vsub.f32 1.0, %v307_v35 }
  0xab   :  { %v309_v38 = vmul.f32 %v637_v34, %v308_v36 }
  0xad   :  { %v310_v40 = vadd.f32 %v637_v34, %v309_v38 }
  0xaf   :  { %v314_v44 = vsel %vm313_vm4, %v637_v34, %v310_v40 }
  0xb0   :  { %v200_v9 = vpop.f32.mrf.mxu0  ;;  %v319_v45 = vsel %vm316_vm5, %v318_v43, %v314_v44 }
  0xb1   :  { %226 = vmatpush.msra.mxu1 %v200_v9 }
  0xb3   :  { %227 = vmatpush.msra.mxu1 %v197_v8 }
  0xb4   :  { %608 = vmatmul.msk.f32.vlgmr.msra.gmra.mxu1 %vm205_vm1, %v203_v10 }
  0xbc   :  { %609 = vmatmul.msk.f32.gmra.mxu1 %vm205_vm1, %v204_v11  ;;  %v536_v11 = vld [vmem:[%s1059_s10 + $0x18] sm:$0xff] }
 0x131   :  { %v229_v14 = vpop.f32.mrf.mxu1 }
 0x132   :  { %v235_v15 = vmax.f32 %v229_v14, 0.0 }
 0x134   :  { %610 = vmatmul.msk.f32.vlgmr.msra.gmra.mxu2 %vm173_vm0, %v235_v15 }
 0x135   :  { %552 = vmatpush.msra.mxu2 %v536_v11 }
 0x137   :  { %553 = vmatpush.msra.mxu2 %v535_v12 }
 0x139   :  { %v232_v16 = vpop.f32.mrf.mxu1  ;;  %554 = vmatpush.msra.mxu2 %v534_v13 }
 0x13a   :  { %v236_v17 = vmax.f32 %v232_v16, 0.0 }
 0x13b   :  { %555 = vmatpush.msra.mxu2 %v533_v27 }
 0x13c   :  { %611 = vmatmul.msk.f32.gmra.mxu2 %vm173_vm0, %v236_v17 }
 0x1b7   :  { %v264_v20 = vpop.f32.mrf.mxu2 }
 0x1bf   :  { %v267_v21 = vpop.f32.mrf.mxu2 }
 0x1c0   :  { %292 = vmatpush.msra.mxu3 %v267_v21 }
 0x1c2   :  { %293 = vmatpush.msra.mxu3 %v264_v20 }
 0x1c3   :  { %612 = vmatmul.msk.f32.vlgmr.msra.gmra.mxu3 %vm205_vm1, %v270_v22 }
 0x1c4   :  { %361 = vmatpush.msrb.mxu3 %v346_v23 }
 0x1c6   :  { %362 = vmatpush.msrb.mxu3 %v345_v24 }
 0x1c8   :  { %502 = vmatpush.msra.mxu3 %v486_v50 }
 0x1ca   :  { %503 = vmatpush.msra.mxu3 %v485_v51 }
 0x1cb   :  { %613 = vmatmul.msk.f32.gmra.mxu3 %vm205_vm1, %v271_v25 }
 0x1cc   :  { %504 = vmatpush.msra.mxu3 %v484_v54 }
 0x1ce   :  { %505 = vmatpush.msra.mxu3 %v483_v55 }
 0x1d3   :  { %615 = vmatmul.msk.f32.vlgmr.msrb.gmra.mxu3 %vm205_vm1, %v301_v18 }
 0x246   :  { %v295_v37 = vpop.f32.mrf.mxu3 }
 0x24e   :  { %v298_v42 = vpop.f32.mrf.mxu3 }
 0x24f   :  { %338 = vmatpush.msrb.mxu1 %v298_v42 }
 0x251   :  { %339 = vmatpush.msrb.mxu1 %v295_v37 }
 0x252   :  { %614 = vmatmul.msk.f32.vlgmr.msrb.gmra.mxu1 %vm205_vm1, %v301_v18 }
 0x256   :  { %v364_v46 = vpop.f32.mrf.mxu3 }
 0x257   :  { %v367_v47 = vmul.f32 %v364_v46, %v319_v45 }
 0x259   :  { %616 = vmatmul.msk.f32.vlgmr.msrb.gmra.mxu0 %vm173_vm0, %v367_v47 }
 0x2cf   :  { %v341_v52 = vpop.f32.mrf.mxu1 }
 0x2d0   :  { %v344_v53 = vmul.f32 %v341_v52, %v319_v45 }
 0x2d2   :  { %617 = vmatmul.msk.f32.vlgmr.msrb.gmra.mxu2 %vm173_vm0, %v344_v53 }
 0x2d6   :  { %v396_v56 = vpop.f32.mrf.mxu0 }
 0x355   :  { %v419_v57 = vpop.f32.mrf.mxu2 }
 0x356   :  { %v420_v58 = vadd.f32 %v419_v57, %v396_v56 }
 0x358   :  { %620 = vmatmul.msk.f32.vlgmr.msra.gmra.mxu3 %vm173_vm0, %v420_v58  ;;  %v422_v59 = vmul.f32 %v420_v58, %v420_v58 }
 0x35a   :  { %v423_v60 = vsel %vm173_vm0, %v422_v59, 0.0 }
 0x35b   :  { %424 = vadd.xlane.f32.xlu0 %v423_v60 }
 0x3ce   :  { %v425_v61 = vpop.xlane.xlu0 %424 }
 0x3cf   :  { %v426_v62 = vadd.f32 1e-09, %v425_v61 }
 0x3d1   :  { %638 = vrsqrt.f32 %v426_v62  ;;  %vm433_vm7 = vweird.f32 %v426_v62 }
 0x3d7   :  { %v639_v63 = vpop.eup %638 }
 0x3d8   :  { %v428_v0 = vmul.f32 %v639_v63, %v426_v62  ;;  %vm434_vm6 = vweird.f32 %v639_v63 }
 0x3d9   :  { %vm435_vm8 = vmor %vm433_vm7, %vm434_vm6 }
 0x3da   :  { %v429_v1 = vmul.f32 %v639_v63, %v428_v0 }
 0x3db   :  { %v507_v2 = vpop.f32.mrf.mxu3 }
 0x3dc   :  { %v430_v3 = vmul.f32 0.5, %v429_v1  ;;  %528 = vmatpush.msra.mxu0 %v507_v2 }
 0x3de   :  { %v431_v4 = vsub.f32 1.5, %v430_v3 }
 0x3e0   :  { %v432_v5 = vmul.f32 %v639_v63, %v431_v4 }
 0x3e2   :  { %v436_v6 = vsel %vm435_vm8, %v639_v63, %v432_v5 }
 0x3e3   :  { %v437_v7 = vmul.f32 %v436_v6, %v420_v58 }
 0x3e5   :  { %618 = vmatpush.xpose.msk.msra.mxu1 %vm173_vm0, %v437_v7 }
 0x3e8   :  { %619 = vmatmul.msk.f32.vlgmr.msra.gmra.mxu1 %vm173_vm0, %v437_v7 }
 0x465   :  { %v458_v8 = vpop.f32.mrf.mxu1 }
 0x466   :  { %vm461_vm10 = vcmp.gt.f32.partialorder %v458_v8, 0.1 }
 0x467   :  { %v462_v9 = vsel %vm461_vm10, %v458_v8, 0.0 }
 0x468   :  { %v464_v10 = vsel %vm463_vm9, %v462_v9, 0.0 }
 0x469   :  { %465 = vadd.xlane.f32.xlu1 %v464_v10 }
 0x4dc   :  { %v466_v14 = vpop.xlane.xlu1 %465 }
 0x4dd   :  { %v467_v15 = vadd.f32 1e-09, %v466_v14 }
 0x4df   :  { %640 = vrcp.f32 %v467_v15  ;;  %v479_v19 = vand.u32 2147483648, %v467_v15  ;;  %v477_v21 = vand.u32 2147483647, %v467_v15  ;;  %vm473_vm12 = vweird.f32 %v467_v15 }
 0x4e1   :  { %v480_v23 = vor.u32 1.1754944e-38, %v479_v19  ;;  %vm478_vm14 = vcmp.eq.f32.partialorder %v477_v21, 8.507059e+37 }
 0x4e5   :  { %v641_v16 = vpop.eup %640 }
 0x4e6   :  { %v469_v17 = vmul.f32 %v641_v16, %v467_v15  ;;  %vm474_vm11 = vweird.f32 %v641_v16 }
 0x4e7   :  { %vm475_vm13 = vmor %vm473_vm12, %vm474_vm11 }
 0x4e8   :  { %v470_v18 = vsub.f32 1.0, %v469_v17 }
 0x4ea   :  { %v471_v20 = vmul.f32 %v641_v16, %v470_v18 }
 0x4ec   :  { %v472_v22 = vadd.f32 %v641_v16, %v471_v20 }
 0x4ee   :  { %v476_v24 = vsel %vm475_vm13, %v641_v16, %v472_v22 }
 0x4ef   :  { %v481_v25 = vsel %vm478_vm14, %v480_v23, %v476_v24 }
 0x4f0   :  { %v482_v26 = vmul.f32 %v481_v25, %v462_v9 }
 0x4f2   :  { %621 = vmatmul.msk.f32.vlgmr.msra.gmra.mxu0 %vm463_vm9, %v482_v26 }
 0x56f   :  { %v530_v28 = vpop.f32.mrf.mxu0 }
 0x570   :  { %622 = vmatmul.msk.f32.vlgmr.msra.gmra.mxu2 %vm173_vm0, %v530_v28 }
 0x5f3   :  { %v557_v29 = vpop.f32.mrf.mxu2 }
 0x5f4   :  { %579 = vmatpush.msrb.mxu1 %v557_v29 }
 0x5f5   :  { %623 = vmatmul.msk.f32.vlgmr.msrb.gmra.mxu1 %vm463_vm9, %v482_v26 }
 0x672   :  { %v581_v31 = vpop.f32.mrf.mxu1 }
 0x673   :  { %v582_v32 = vadd.f32 %v635_v30, %v581_v31 }
 0x675   :  { %584 = vst.msk [vmem:[#allocation16] sm:$0xff] %vm463_vm9, %v582_v32 }
 0x676   :  { %595 = dma.vmem_to_hbm [thread:$0]  %s591_s6, 128, %s593_s17, [#allocation4]  }
 0x677   :  { %868 = dma.done.wait [#allocation4], 128  }
 0x678   :  { %869 = vsyncadd [#allocation4], 4294967168 }
 0x679   :  { %600 = vsyncpa [#allocation3], 1 }
 0x67a   :  { %601 = vsyncpa [#allocation6], 1 }
 0x67b   :  { %602 = vsyncpa [#allocation9], 1 }
 0x67c   :  { %603 = vsyncpa [#allocation12], 1 }
 0x67d   :  { %604 = vsyncpa [#allocation15], 1 }
 0x67e   :  { %605 = vsyncpa [#allocation4], 1 }

</bundles_post_ra>
